<compile_context>
chip_gen: v5e
topology: v5e:2x2
jax: 0.10.0
libtpu: 0.0.40
codegen_flags: <defaults>
</compile_context>

<pallas_src>
import jax
import jax.numpy as jnp
from jax.experimental import pallas as pl
from jax.experimental.pallas import tpu as pltpu

LANE = 128
SUBLANE_BF16 = 16   # bf16 packs 16 rows per sublane tile; also a multiple of the f32 8-row tile


def _round_up(n, m):
    return ((n + m - 1) // m) * m


def mlp_kernel(x_ref, w1_ref, b1_ref, w2_ref, b2_ref, o_ref):
    # Cast the streamed x tile to bf16 in-kernel (fused with the HBM load; no wrapper copy).
    x = x_ref[...].astype(w1_ref.dtype)
    # Linear 1 (bf16 operands, f32 MXU accumulation) + bias + ReLU.
    h = jnp.dot(x, w1_ref[...], preferred_element_type=jnp.float32)
    h = jnp.maximum(h + b1_ref[...], 0.0)          # b1 is (1, Hp) -> broadcasts over batch tile
    # Dropout: identity at inference.
    # TODO(synk): training-mode dropout would need pltpu.prng_seed / prng_random_bits masking.
    h = h.astype(w2_ref.dtype)                     # keep matmul 2 on the bf16 MXU path
    o = jnp.dot(h, w2_ref[...], preferred_element_type=jnp.float32)
    o_ref[...] = (o + b2_ref[...]).astype(o_ref.dtype)   # lane-dense (tb, 128) bf16 store


def prepare_params(w1, b1, w2, b2, compute_dtype=jnp.bfloat16):
    """One-time pad + cast of the (small) weights/biases, hoisted off the per-call path.

    H and O are zero-padded to multiples of 128 so both matmuls hit clean MXU tiles and
    the output store is full-width (lane-dense). Pads are exact zeros -> exact results.
    w1: [F, H], b1: [H], w2: [H, O], b2: [O].
    """
    F, H = w1.shape
    O = w2.shape[1]
    Hp = _round_up(H, LANE)
    Op = _round_up(O, LANE)
    w1_p = jnp.zeros((F, Hp), compute_dtype).at[:, :H].set(w1.astype(compute_dtype))
    w2_p = jnp.zeros((Hp, Op), compute_dtype).at[:H, :O].set(w2.astype(compute_dtype))
    b1_p = jnp.zeros((1, Hp), jnp.float32).at[0, :H].set(b1.astype(jnp.float32))
    b2_p = jnp.zeros((1, Op), jnp.float32).at[0, :O].set(b2.astype(jnp.float32))
    return (w1_p, b1_p, w2_p, b2_p)


def au_classifier_mlp(x, params, out_features=12, *, tile_b=1024, store_dtype=jnp.bfloat16):
    """AU_ClassifierMLP forward (eval mode).

    x:      [B, F] float32 (or bf16 if produced upstream — cast happens in-kernel)
    params: output of prepare_params()
    Returns [B, out_features] float32 logits.
    """
    w1_p, b1_p, w2_p, b2_p = params
    B, F = x.shape
    assert w1_p.shape[0] == F, "x feature dim must match W1"
    Hp = w1_p.shape[1]
    Op = w2_p.shape[1]

    # Batch tile: multiple of 16 (bf16 sublane packing); keep >= ~4 grid steps when B allows
    # so the x-tile double buffer overlaps DMA with compute and the "parallel" batch grid
    # splits across both v7x TensorCores. tile_b=1024 stays well inside v5e's 16 MiB VMEM.
    tb = _round_up(min(tile_b, B), SUBLANE_BF16)
    tb = max(SUBLANE_BF16, min(tb, _round_up(pl.cdiv(B, 4), SUBLANE_BF16)))
    grid = (pl.cdiv(B, tb),)   # ragged batch: partial last block, OOB writes are masked

    cost = pl.CostEstimate(
        flops=2 * B * F * Hp + 2 * B * Hp * Op,        # Op padding is ~free on the MXU anyway
        transcendentals=0,
        bytes_accessed=(B * F * x.dtype.itemsize                      # x streamed as-is
                        + w1_p.size * w1_p.dtype.itemsize             # W1 (resident)
                        + w2_p.size * w2_p.dtype.itemsize             # W2 (resident)
                        + (Hp + Op) * 4                               # biases
                        + B * Op * jnp.dtype(store_dtype).itemsize),  # bf16 output store
    )

    out = pl.pallas_call(
        mlp_kernel,
        out_shape=jax.ShapeDtypeStruct((B, Op), store_dtype),
        grid_spec=pltpu.PrefetchScalarGridSpec(
            num_scalar_prefetch=0,
            grid=grid,
            in_specs=[
                pl.BlockSpec((tb, F), lambda i: (i, 0)),    # streamed x tile (HBM-bound stream)
                pl.BlockSpec((F, Hp), lambda i: (0, 0)),    # W1: resident across the grid
                pl.BlockSpec((1, Hp), lambda i: (0, 0)),    # b1
                pl.BlockSpec((Hp, Op), lambda i: (0, 0)),   # W2 (lane-padded to 128)
                pl.BlockSpec((1, Op), lambda i: (0, 0)),    # b2
            ],
            out_specs=pl.BlockSpec((tb, Op), lambda i: (i, 0)),
        ),
        compiler_params=pltpu.CompilerParams(
            dimension_semantics=("parallel",),   # shards the batch grid across TCs on v7x
        ),
        cost_estimate=cost,
    )(x, w1_p, b1_p, w2_p, b2_p)

    # Drop the zero-padded output lanes (exact zeros); upcast the tiny [B, 12] result to f32.
    return out[:, :out_features].astype(jnp.float32)


def reference_mlp(x, w1, b1, w2, b2):
    """Pure-JAX reference mirroring the kernel's bf16-operand / f32-accumulate path."""
    xb, w1b, w2b = (a.astype(jnp.bfloat16) for a in (x, w1, w2))
    h = jnp.dot(xb, w1b, preferred_element_type=jnp.float32) + b1[None, :]
    h = jnp.maximum(h, 0.0).astype(jnp.bfloat16)
    return jnp.dot(h, w2b, preferred_element_type=jnp.float32) + b2[None, :]


if __name__ == "__main__":
    # Small shapes consistent with the module defaults (in_features=512, hidden=256, out=12).
    B, F = 64, 512
    H = F // 2
    O = 12

    key = jax.random.PRNGKey(0)
    kx, k1, kb1, k2, kb2 = jax.random.split(key, 5)

    x = jax.random.normal(kx, (B, F), dtype=jnp.float32)
    w1 = jax.random.normal(k1, (F, H), dtype=jnp.float32) * (1.0 / jnp.sqrt(F))
    b1 = jax.random.normal(kb1, (H,), dtype=jnp.float32) * 0.01
    w2 = jax.random.normal(k2, (H, O), dtype=jnp.float32) * (1.0 / jnp.sqrt(H))
    b2 = jax.random.normal(kb2, (O,), dtype=jnp.float32) * 0.01

    params = prepare_params(w1, b1, w2, b2)   # one-time pad/cast, hoisted off the hot path
    out = au_classifier_mlp(x, params, out_features=O)
    out = jax.block_until_ready(out)
    assert out.shape == (B, O)

    ref = reference_mlp(x, w1, b1, w2, b2)
    assert jnp.allclose(out, ref, atol=3e-2, rtol=3e-2), "mismatch vs pure-JAX reference"

    print("KERNEL_OK")
</pallas_src>

<mosaic_0001>
module attributes {stable_mosaic.version = 11 : i64} {
  func.func @mlp_kernel(%arg0: i32, %arg1: memref<16x512xf32, #tpu.memory_space<vmem>>, %arg2: memref<512x256xbf16, #tpu.memory_space<vmem>>, %arg3: memref<1x256xf32, #tpu.memory_space<vmem>>, %arg4: memref<256x128xbf16, #tpu.memory_space<vmem>>, %arg5: memref<1x128xf32, #tpu.memory_space<vmem>>, %arg6: memref<16x128xbf16, #tpu.memory_space<vmem>>) attributes {dimension_semantics = [#tpu.dimension_semantics<parallel>], iteration_bounds = array<i64: 4>, scalar_prefetch = 0 : i64, scratch_operands = 0 : i64, tpu.core_type = #tpu.core_type<tc>, window_params = [{transform_indices = @transform_0, window_bounds = array<i64: 16, 512>}, {pipeline_mode = #tpu.pipeline_mode<synchronous>, transform_indices = @transform_1, window_bounds = array<i64: 512, 256>}, {pipeline_mode = #tpu.pipeline_mode<synchronous>, transform_indices = @transform_2, window_bounds = array<i64: 1, 256>}, {pipeline_mode = #tpu.pipeline_mode<synchronous>, transform_indices = @transform_3, window_bounds = array<i64: 256, 128>}, {pipeline_mode = #tpu.pipeline_mode<synchronous>, transform_indices = @transform_4, window_bounds = array<i64: 1, 128>}, {transform_indices = @transform_5, window_bounds = array<i64: 16, 128>}]} {
    %c0 = arith.constant 0 : index
    %c0_0 = arith.constant 0 : index
    %0 = vector.load %arg1[%c0, %c0_0] : memref<16x512xf32, #tpu.memory_space<vmem>>, vector<16x512xf32>
    %1 = arith.truncf %0 : vector<16x512xf32> to vector<16x512xbf16>
    %c0_1 = arith.constant 0 : index
    %c0_2 = arith.constant 0 : index
    %2 = vector.load %arg2[%c0_1, %c0_2] : memref<512x256xbf16, #tpu.memory_space<vmem>>, vector<512x256xbf16>
    %cst = arith.constant dense<0.000000e+00> : vector<16x256xf32>
    %3 = tpu.matmul %1, %2, %cst {dimension_numbers = #tpu.dot_dimension_numbers<[1], [0], [0], [1], [0, 0, 1, 1], [], []>} : vector<16x512xbf16>, vector<512x256xbf16>, vector<16x256xf32> -> vector<16x256xf32>
    %c0_3 = arith.constant 0 : index
    %c0_4 = arith.constant 0 : index
    %4 = vector.load %arg3[%c0_3, %c0_4] : memref<1x256xf32, #tpu.memory_space<vmem>>, vector<1x256xf32>
    %5 = vector.broadcast %4 : vector<1x256xf32> to vector<16x256xf32>
    %6 = arith.addf %3, %5 : vector<16x256xf32>
    %cst_5 = arith.constant 0.000000e+00 : f32
    %7 = vector.broadcast %cst_5 : f32 to vector<16x256xf32>
    %8 = arith.maximumf %6, %7 : vector<16x256xf32>
    %9 = arith.truncf %8 : vector<16x256xf32> to vector<16x256xbf16>
    %c0_6 = arith.constant 0 : index
    %c0_7 = arith.constant 0 : index
    %10 = vector.load %arg4[%c0_6, %c0_7] : memref<256x128xbf16, #tpu.memory_space<vmem>>, vector<256x128xbf16>
    %cst_8 = arith.constant dense<0.000000e+00> : vector<16x128xf32>
    %11 = tpu.matmul %9, %10, %cst_8 {dimension_numbers = #tpu.dot_dimension_numbers<[1], [0], [0], [1], [0, 0, 1, 1], [], []>} : vector<16x256xbf16>, vector<256x128xbf16>, vector<16x128xf32> -> vector<16x128xf32>
    %c0_9 = arith.constant 0 : index
    %c0_10 = arith.constant 0 : index
    %12 = vector.load %arg5[%c0_9, %c0_10] : memref<1x128xf32, #tpu.memory_space<vmem>>, vector<1x128xf32>
    %13 = vector.broadcast %12 : vector<1x128xf32> to vector<16x128xf32>
    %14 = arith.addf %11, %13 : vector<16x128xf32>
    %15 = arith.truncf %14 : vector<16x128xf32> to vector<16x128xbf16>
    %c0_11 = arith.constant 0 : index
    %c0_12 = arith.constant 0 : index
    %16 = vector.load %arg6[%c0_11, %c0_12] : memref<16x128xbf16, #tpu.memory_space<vmem>>, vector<16x128xbf16>
    tpu.vector_store %arg6[%c0_11, %c0_12], %15 {strides = array<i32>} : memref<16x128xbf16, #tpu.memory_space<vmem>>, vector<16x128xbf16>,
    return
  }
  func.func @transform_0(%arg0: i32) -> (i32, i32) {
    %c0_i32 = arith.constant 0 : i32
    %c0_i32_0 = arith.constant 0 : i32
    return %arg0, %c0_i32 : i32, i32
  }
  func.func @transform_1(%arg0: i32) -> (i32, i32) {
    %c0_i32 = arith.constant 0 : i32
    %c0_i32_0 = arith.constant 0 : i32
    %c0_i32_1 = arith.constant 0 : i32
    return %c0_i32, %c0_i32_0 : i32, i32
  }
  func.func @transform_2(%arg0: i32) -> (i32, i32) {
    %c0_i32 = arith.constant 0 : i32
    %c0_i32_0 = arith.constant 0 : i32
    %c0_i32_1 = arith.constant 0 : i32
    return %c0_i32, %c0_i32_0 : i32, i32
  }
  func.func @transform_3(%arg0: i32) -> (i32, i32) {
    %c0_i32 = arith.constant 0 : i32
    %c0_i32_0 = arith.constant 0 : i32
    %c0_i32_1 = arith.constant 0 : i32
    return %c0_i32, %c0_i32_0 : i32, i32
  }
  func.func @transform_4(%arg0: i32) -> (i32, i32) {
    %c0_i32 = arith.constant 0 : i32
    %c0_i32_0 = arith.constant 0 : i32
    %c0_i32_1 = arith.constant 0 : i32
    return %c0_i32, %c0_i32_0 : i32, i32
  }
  func.func @transform_5(%arg0: i32) -> (i32, i32) {
    %c0_i32 = arith.constant 0 : i32
    %c0_i32_0 = arith.constant 0 : i32
    return %arg0, %c0_i32 : i32, i32
  }
}

</mosaic_0001>

<bundles_post_ra>
// kernel: tpu_custom_call.1
= control target key start
LH: loop header
LB: loop body
LE: loop exit
PB: predicated region body
PF: predicated region fallthrough
CT: control target
= control target key end

     0   :  { %10 = vsyncpa [#allocation3], 0  ;;  %s2038_s0 = inlined_call_operand.hbm [shape: f32[64,512], index: 0, kind: input, shape index: {}]   ;;  %s2039_s1 = inlined_call_operand.hbm [shape: bf16[512,256], index: 1, kind: input, shape index: {}]   ;;  %s2040_s2 = inlined_call_operand.hbm [shape: f32[1,256], index: 2, kind: input, shape index: {}]   ;;  %s2041_s3 = inlined_call_operand.hbm [shape: bf16[256,128], index: 3, kind: input, shape index: {}]   ;;  %s2042_s4 = inlined_call_operand.vmem [shape: f32[1,128], index: 4, kind: input, shape index: {}]   ;;  %s2043_s5 = inlined_call_operand.hbm [shape: bf16[64,128], index: 5, kind: output, shape index: {}]  }
   0x1   :  { %12 = vsyncpa [#allocation3 + $0x1], 0 }
   0x2   :  { %13 = vsyncpa [#allocation6], 0 }
   0x3   :  { %14 = vsyncpa [#allocation9], 0 }
   0x4   :  { %15 = vsyncpa [#allocation4], 0 }
   0x5   :  { %17 = vsyncpa [#allocation4 + $0x1], 0  ;;  %s1850_s18 = smov 0   ;;  %s1852_s19 = smov 0  }
   0x6   :  { %s1854_s20 = smov 0   ;;  %s1856_s21 = smov 0  }
   0x7 LB: > { %s1871_s22 = sadd.s32 4294967295, %s1807_s21   ;;  %s1098_s23 = sadd.s32 4294967294, %s1807_s21   ;;  %s1807_s21 = sphi %s1856_s21, %s2053_s21   ;;  %s1803_s20 = sphi %s1854_s20, %s2052_s20   ;;  %s1799_s19 = sphi %s1852_s19, %s2051_s19   ;;  %s1795_s18 = sphi %s1850_s18, %s2050_s18  }
   0x8   : > { %p43_p0 = scmp.ne.s32.totalorder %s1799_s19, %s1795_s18  ;;  %p44_p1 = scmp.eq.s32.totalorder %s1871_s22, 0 }
   0x9   : > { %p151_p2 = scmp.eq.s32.totalorder %s1871_s22, 3  ;;  %p157_p3 = scmp.eq.s32.totalorder %s1098_s23, 3 }
   0xa   : > { %p1880_p4 = por %p44_p1, %p43_p0  ;;  %p1099_p5 = scmp.ge.s32.totalorder %s1807_s21, 1 }
   0xb   : > { %p1885_p6 = por %p157_p3, %p43_p0  ;;  %p164_p7 = scmp.lt.s32.totalorder %s1807_s21, 5 }
   0xc   : > { %s175_s28 = sshll.u32 %s2039_s1, 4  ;;  %s1809_s30 = smov [#allocation5]   ;;  %s176_s28 = int_to_ptr.hbm [resolvable:$true] %s175_s28 }
   0xd   : > { %p1893_p8 = pnand %p1099_p5, %p164_p7  ;;  %s177_s6 = sshll.u32 %s1809_s30, 4  ;;  %s178_s6 = int_to_ptr.vmem [resolvable:$true] %s177_s6 }
   0xe   : > { %s190_s10 = sshll.u32 %s2040_s2, 4  ;;  %s1810_s11 = smov 128   ;;  %s191_s10 = int_to_ptr.hbm [resolvable:$true] %s190_s10 }
   0xf   : > { %p1543_p9 = pneg %p1893_p8  ;;  %s1811_s12 = smov 8  }
  0x10   : > { %s1812_s13 = smov [#allocation7]   ;;  %s201_s17 = sshll.u32 %s2041_s3, 4  ;;  %s202_s17 = int_to_ptr.hbm [resolvable:$true] %s201_s17 }
  0x11   : > { %p1901_p10 = pnand %p1543_p9, %p44_p1  ;;  %s192_s14 = sshll.u32 %s1812_s13, 4  ;;  %s193_s14 = int_to_ptr.vmem [resolvable:$true] %s192_s14 }
  0x12   : > { %s1813_s23 = smov [#allocation8]   ;;  %s1814_s27 = smov 64  }
  0x13   : > { %1546 = dma.hbm_to_vmem [thread:$0]  (!%p1901_p10), %s176_s28, 8192, %s178_s6, [#allocation6], %s1810_s11, %s1810_s11, %s1811_s12  }
  0x14   : > { %1549 = dma.hbm_to_vmem [thread:$0]  (!%p1901_p10), %s191_s10, 32, %s193_s14, [#allocation6]  }
  0x15   : > { %s203_s26 = sshll.u32 %s1813_s23, 4  ;;  %s1815_s28 = smov 4   ;;  %s204_s26 = int_to_ptr.vmem [resolvable:$true] %s203_s26 }
  0x16   : > { %1552 = dma.hbm_to_vmem [thread:$0]  (!%p1901_p10), %s202_s17, 2048, %s204_s26, [#allocation9], %s1814_s27, %s1814_s27, %s1815_s28  }
  0x17   : > { %s1918_s30 = sadd.s32 1, %s1807_s21   ;;  %s30_s8 = sadd.s32 1, %s1803_s20 }
  0x18   : > { %s27_s6 = ssub.s32 %s1807_s21, %s1918_s30  ;;  %p37_p12 = scmp.ne.s32.totalorder %s1803_s20, %s1799_s19 }
  0x19   : > { %p28_p11 = scmp.eq.s32.totalorder %s27_s6, 0  ;;  %p38_p13 = scmp.eq.s32.totalorder %s1807_s21, 0 }
  0x1a   : > { %p1564_p0 = scmp.lt.s32.totalorder %s1807_s21, 4  ;;  %p1932_p5 = por %p151_p2, %p37_p12 }
  0x1b   : > { %s1928_s9 = scalar_select %p28_p11, %s1803_s20, %s30_s8  }
  0x1c   : > { %p39_p3 = por %p38_p13, %p37_p12  ;;  %s220_s7 = sand.u32 1, %s1803_s20  }
  0x1d   : > { %s1440_s11 = sshll.u32 %s1807_s21, 6  ;;  %s1104_s12 = sshll.u32 %s220_s7, 6 }
  0x1e   : > { %s230_s15 = scalar_lea.hbm %s2038_s0, %s1440_s11  ;;  %s224_s17 = scalar_lea.vmem [#allocation2], %s1104_s12 }
  0x1f   : > { %s231_s16 = sshll.u32 %s230_s15, 4  ;;  %s233_s23 = sshll.u32 %s224_s17, 4  ;;  %s232_s16 = int_to_ptr.hbm [resolvable:$true] %s231_s16  ;;  %s234_s23 = int_to_ptr.vmem [resolvable:$true] %s233_s23 }
  0x20   : > { %p1943_p7 = pnand %p1564_p0, %p39_p3  ;;  %s221_s27 = scalar_lea.sflag [#allocation3], %s220_s7 }
  0x21   : > { %s1703_s28 = sshra.s32 %s232_s16, 4  ;;  %s1710_s12 = scalar_lea.hbm %s2038_s0, 256  ;;  %s1704_s28 = int_to_ptr.hbm [resolvable:$true] %s1703_s28 }
  0x22   : > { %s1705_s6 = scalar_lea.hbm %s1704_s28, 64  ;;  %p1707_p9 = pneg %p1943_p7 }
  0x23   : > { %p1706_p2 = scmp.ne.s32.totalorder %s1704_s28, %s1705_s6  ;;  %p1711_p12 = scmp.lt.s32.totalorder %s1704_s28, %s2038_s0 }
  0x24   : > { %p1712_p13 = scmp.lt.s32.totalorder %s1710_s12, %s1705_s6 }
  0x25   : > { %p1708_p10 = pnand %p1707_p9, %p1706_p2 }
  0x26   : > { %p1713_p0 = por %p1712_p13, %p1711_p12 }
  0x27   : > { %p1709_p11 = pneg %p1708_p10 }
  0x29   : > { %p1714_p3 = pnand %p1713_p0, %p1709_p11 }
  0x2b   : > { %1717 = shalt.err (!%p1714_p3)
}
  0x2c   : > { %s1816_s7 = smov 512   ;;  %s1817_s15 = smov 32  }
  0x2d   : > { %1556 = dma.hbm_to_vmem [thread:$0]  (!%p1943_p7), %s232_s16, 1024, %s234_s23, %s221_s27, %s1816_s7, %s1816_s7, %s1817_s15  }
  0x2e   : > { %245 = sbr.rel (%p1893_p8) target bundleno = 414 (0x19e), region = 40  ;;  %s1960_s17 = sand.u32 (!%p1893_p8), 1, %s1799_s19  }
  0x2f   : > { %s1109_s8 = sshll.u32 (!%p1893_p8), %s1960_s17, 6  ;;  %s248_s28 = scalar_lea.sflag (!%p1893_p8), [#allocation3], %s1960_s17 }
  0x30   : > { %s1964_s6 = scalar_lea.vmem (!%p1893_p8), [#allocation2], %s1109_s8 }
  0x33   : > { %1778 = dma.done.wait (%p1880_p4), %s248_s28, 1024  }
  0x34   : > { %1780 = vsyncadd (%p1880_p4), %s248_s28, 4294966272 }
  0x35   : > { %1782 = dma.done.wait (%p44_p1), [#allocation6], 8224  }
  0x36   : > { %1784 = vsyncadd (%p44_p1), [#allocation6], 4294959072 }
  0x37   : > { %1786 = dma.done.wait (%p44_p1), [#allocation9], 2048  }
  0x38   : > { %1788 = vsyncadd (%p44_p1), [#allocation9], 4294965248  ;;  %v1172_v0 = vld [vmem:[#allocation5 + $0x70] sm:$0xf]  ;;  %v1456_v1 = vld [vmem:[#allocation5 + $0x74] sm:$0xf0] }
  0x39   : > { %v1236_v2 = vld [vmem:[#allocation5 + $0xf0] sm:$0xf]  ;;  %v1173_v3 = vor.u32 %v1456_v1, %v1172_v0  ;;  %v1472_v4 = vld [vmem:[#allocation5 + $0xf4] sm:$0xf0]  ;;  %v1164_v11 = vld [vmem:[#allocation5 + $0x60] sm:$0xf] }
  0x3a   : > { %v1300_v5 = vld [vmem:[#allocation5 + $0x170] sm:$0xf]  ;;  %v1488_v6 = vld [vmem:[#allocation5 + $0x174] sm:$0xf0]  ;;  %v1237_v7 = vor.u32 %v1472_v4, %v1236_v2  ;;  %v1454_v13 = vld [vmem:[#allocation5 + $0x64] sm:$0xf0] }
  0x3b   : > { %v1301_v8 = vor.u32 %v1488_v6, %v1300_v5  ;;  %v1364_v9 = vld [vmem:[#allocation5 + $0x1f0] sm:$0xf]  ;;  %v1504_v10 = vld [vmem:[#allocation5 + $0x1f4] sm:$0xf0]  ;;  %698 = vmatpush.bf16.msra.mxu0 %v1173_v3  ;;  %v1228_v14 = vld [vmem:[#allocation5 + $0xe0] sm:$0xf]  ;;  %v1165_v16 = vor.u32 %v1454_v13, %v1164_v11 }
  0x3c   : > { %v1365_v12 = vor.u32 %v1504_v10, %v1364_v9  ;;  %v1470_v15 = vld [vmem:[#allocation5 + $0xe4] sm:$0xf0]  ;;  %712 = vmatpush.bf16.msra.mxu1 %v1237_v7  ;;  %v1292_v18 = vld [vmem:[#allocation5 + $0x160] sm:$0xf]  ;;  %v1156_v23 = vld [vmem:[#allocation5 + $0x50] sm:$0xf] }
  0x3d   : > { %726 = vmatpush.bf16.msra.mxu2 %v1301_v8  ;;  %v1229_v17 = vor.u32 %v1470_v15, %v1228_v14  ;;  %v1486_v19 = vld [vmem:[#allocation5 + $0x164] sm:$0xf0]  ;;  %v1356_v20 = vld [vmem:[#allocation5 + $0x1e0] sm:$0xf]  ;;  %v1452_v24 = vld [vmem:[#allocation5 + $0x54] sm:$0xf0] }
  0x3e   : > { %740 = vmatpush.bf16.msra.mxu3 %v1365_v12  ;;  %v1293_v21 = vor.u32 %v1486_v19, %v1292_v18  ;;  %v1502_v22 = vld [vmem:[#allocation5 + $0x1e4] sm:$0xf0]  ;;  %v1220_v26 = vld [vmem:[#allocation5 + $0xd0] sm:$0xf]  ;;  %v1468_v27 = vld [vmem:[#allocation5 + $0xd4] sm:$0xf0]  ;;  %v1157_v29 = vor.u32 %v1452_v24, %v1156_v23 }
  0x3f   : > { %v1357_v25 = vor.u32 %v1502_v22, %v1356_v20  ;;  %v1284_v28 = vld [vmem:[#allocation5 + $0x150] sm:$0xf]  ;;  %699 = vmatpush.bf16.msra.mxu0 %v1165_v16  ;;  %v1484_v30 = vld [vmem:[#allocation5 + $0x154] sm:$0xf0]  ;;  %v1221_v33 = vor.u32 %v1468_v27, %v1220_v26  ;;  %v1148_v35 = vld [vmem:[#allocation5 + $0x40] sm:$0xf] }
  0x40   : > { %v1348_v31 = vld [vmem:[#allocation5 + $0x1d0] sm:$0xf]  ;;  %v1500_v32 = vld [vmem:[#allocation5 + $0x1d4] sm:$0xf0]  ;;  %713 = vmatpush.bf16.msra.mxu1 %v1229_v17  ;;  %v1285_v34 = vor.u32 %v1484_v30, %v1284_v28  ;;  %v1450_v36 = vld [vmem:[#allocation5 + $0x44] sm:$0xf0] }
  0x41   : > { %727 = vmatpush.bf16.msra.mxu2 %v1293_v21  ;;  %v1212_v37 = vld [vmem:[#allocation5 + $0xc0] sm:$0xf]  ;;  %v1349_v38 = vor.u32 %v1500_v32, %v1348_v31  ;;  %v1466_v39 = vld [vmem:[#allocation5 + $0xc4] sm:$0xf0]  ;;  %v1149_v44 = vor.u32 %v1450_v36, %v1148_v35  ;;  %v1140_v47 = vld [vmem:[#allocation5 + $0x30] sm:$0xf] }
  0x42   : > { %741 = vmatpush.bf16.msra.mxu3 %v1357_v25  ;;  %v1276_v40 = vld [vmem:[#allocation5 + $0x140] sm:$0xf]  ;;  %v1482_v41 = vld [vmem:[#allocation5 + $0x144] sm:$0xf0]  ;;  %v1213_v45 = vor.u32 %v1466_v39, %v1212_v37  ;;  %v1448_v48 = vld [vmem:[#allocation5 + $0x34] sm:$0xf0] }
  0x43   : > { %v1340_v42 = vld [vmem:[#allocation5 + $0x1c0] sm:$0xf]  ;;  %v1498_v43 = vld [vmem:[#allocation5 + $0x1c4] sm:$0xf0]  ;;  %700 = vmatpush.bf16.msra.mxu0 %v1157_v29  ;;  %v1277_v46 = vor.u32 %v1482_v41, %v1276_v40  ;;  %v1204_v49 = vld [vmem:[#allocation5 + $0xb0] sm:$0xf]  ;;  %v1141_v56 = vor.u32 %v1448_v48, %v1140_v47 }
  0x44   : > { %714 = vmatpush.bf16.msra.mxu1 %v1221_v33  ;;  %v1341_v50 = vor.u32 %v1498_v43, %v1340_v42  ;;  %v1464_v51 = vld [vmem:[#allocation5 + $0xb4] sm:$0xf0]  ;;  %v1268_v52 = vld [vmem:[#allocation5 + $0x130] sm:$0xf]  ;;  %v1132_v59 = vld [vmem:[#allocation5 + $0x20] sm:$0xf] }
  0x45   : > { %728 = vmatpush.bf16.msra.mxu2 %v1285_v34  ;;  %v1480_v53 = vld [vmem:[#allocation5 + $0x134] sm:$0xf0]  ;;  %v1332_v54 = vld [vmem:[#allocation5 + $0x1b0] sm:$0xf]  ;;  %v1205_v57 = vor.u32 %v1464_v51, %v1204_v49  ;;  %v1446_v60 = vld [vmem:[#allocation5 + $0x24] sm:$0xf0] }
  0x46   : > { %742 = vmatpush.bf16.msra.mxu3 %v1349_v38  ;;  %v1496_v55 = vld [vmem:[#allocation5 + $0x1b4] sm:$0xf0]  ;;  %v1269_v58 = vor.u32 %v1480_v53, %v1268_v52  ;;  %v1196_v61 = vld [vmem:[#allocation5 + $0xa0] sm:$0xf]  ;;  %v1462_v63 = vld [vmem:[#allocation5 + $0xa4] sm:$0xf0]  ;;  %v1133_v4 = vor.u32 %v1446_v60, %v1132_v59 }
  0x47   : > { %701 = vmatpush.bf16.msra.mxu0 %v1149_v44  ;;  %v1333_v62 = vor.u32 %v1496_v55, %v1332_v54  ;;  %v1260_v0 = vld [vmem:[#allocation5 + $0x120] sm:$0xf]  ;;  %v1478_v1 = vld [vmem:[#allocation5 + $0x124] sm:$0xf0]  ;;  %v1124_v5 = vld [vmem:[#allocation5 + $0x10] sm:$0xf]  ;;  %v1197_v6 = vor.u32 %v1462_v63, %v1196_v61 }
  0x48   : > { %715 = vmatpush.bf16.msra.mxu1 %v1213_v45  ;;  %v1324_v2 = vld [vmem:[#allocation5 + $0x1a0] sm:$0xf]  ;;  %v1494_v3 = vld [vmem:[#allocation5 + $0x1a4] sm:$0xf0]  ;;  %v1261_v7 = vor.u32 %v1478_v1, %v1260_v0  ;;  %v1444_v8 = vld [vmem:[#allocation5 + $0x14] sm:$0xf0] }
  0x49   : > { %729 = vmatpush.bf16.msra.mxu2 %v1277_v46  ;;  %v1188_v9 = vld [vmem:[#allocation5 + $0x90] sm:$0xf]  ;;  %v1460_v10 = vld [vmem:[#allocation5 + $0x94] sm:$0xf0]  ;;  %v1325_v11 = vor.u32 %v1494_v3, %v1324_v2  ;;  %v1116_v16 = vld [vmem:[#allocation5] sm:$0xf]  ;;  %v1125_v18 = vor.u32 %v1444_v8, %v1124_v5 }
  0x4a   : > { %743 = vmatpush.bf16.msra.mxu3 %v1341_v50  ;;  %v1252_v12 = vld [vmem:[#allocation5 + $0x110] sm:$0xf]  ;;  %v1476_v13 = vld [vmem:[#allocation5 + $0x114] sm:$0xf0]  ;;  %v1442_v17 = vld [vmem:[#allocation5 + $0x4] sm:$0xf0]  ;;  %v1189_v23 = vor.u32 %v1460_v10, %v1188_v9 }
  0x4b   : > { %702 = vmatpush.bf16.msra.mxu0 %v1141_v56  ;;  %v1316_v14 = vld [vmem:[#allocation5 + $0x190] sm:$0xf]  ;;  %v1492_v15 = vld [vmem:[#allocation5 + $0x194] sm:$0xf0]  ;;  %v1180_v19 = vld [vmem:[#allocation5 + $0x80] sm:$0xf]  ;;  %v1253_v24 = vor.u32 %v1476_v13, %v1252_v12  ;;  %v1117_v35 = vor.u32 %v1442_v17, %v1116_v16 }
  0x4c   : > { %716 = vmatpush.bf16.msra.mxu1 %v1205_v57  ;;  %v1458_v20 = vld [vmem:[#allocation5 + $0x84] sm:$0xf0]  ;;  %v1244_v21 = vld [vmem:[#allocation5 + $0x100] sm:$0xf]  ;;  %v1455_v27 = vld [vmem:[#allocation5 + $0x74] sm:$0xf]  ;;  %v1317_v28 = vor.u32 %v1492_v15, %v1316_v14 }
  0x4d   : > { %730 = vmatpush.bf16.msra.mxu2 %v1269_v58  ;;  %v1474_v22 = vld [vmem:[#allocation5 + $0x104] sm:$0xf0]  ;;  %v1308_v25 = vld [vmem:[#allocation5 + $0x180] sm:$0xf]  ;;  %v1174_v29 = vld [vmem:[#allocation5 + $0x78] sm:$0xf0]  ;;  %v1181_v39 = vor.u32 %v1458_v20, %v1180_v19 }
  0x4e   : > { %744 = vmatpush.bf16.msra.mxu3 %v1333_v62  ;;  %v1490_v26 = vld [vmem:[#allocation5 + $0x184] sm:$0xf0]  ;;  %v1471_v30 = vld [vmem:[#allocation5 + $0xf4] sm:$0xf]  ;;  %v1238_v31 = vld [vmem:[#allocation5 + $0xf8] sm:$0xf0]  ;;  %v1245_v40 = vor.u32 %v1474_v22, %v1244_v21  ;;  %v1177_v45 = vor.u32 %v1455_v27, %v1174_v29 }
  0x4f   : > { %703 = vmatpush.bf16.msra.mxu0 %v1133_v4  ;;  %v1487_v32 = vld [vmem:[#allocation5 + $0x174] sm:$0xf]  ;;  %v1302_v33 = vld [vmem:[#allocation5 + $0x178] sm:$0xf0]  ;;  %v296_v41 = vld [vmem:[%s1964_s6] sm:$0xff]  ;;  %v1309_v44 = vor.u32 %v1490_v26, %v1308_v25  ;;  %v1241_v49 = vor.u32 %v1471_v30, %v1238_v31  ;;  %s1113_s24 = sshll.u32 %s1960_s17, 3 }
  0x50   : > { %717 = vmatpush.bf16.msra.mxu1 %v1197_v6  ;;  %v1503_v34 = vld [vmem:[#allocation5 + $0x1f4] sm:$0xf]  ;;  %v1366_v36 = vld [vmem:[#allocation5 + $0x1f8] sm:$0xf0]  ;;  %v300_v42 = vld [vmem:[%s1964_s6 + $0x20] sm:$0xff]  ;;  %v1305_v50 = vor.u32 %v1487_v32, %v1302_v33  ;;  %s1521_s29 = sshll.u32 %s1871_s22, 3 }
  0x51   : > { %731 = vmatpush.bf16.msra.mxu2 %v1261_v7  ;;  %v298_v37 = vld [vmem:[%s1964_s6 + $0x10] sm:$0xff]  ;;  %v299_v43 = vld [vmem:[%s1964_s6 + $0x18] sm:$0xff]  ;;  %v1453_v47 = vld [vmem:[#allocation5 + $0x64] sm:$0xf]  ;;  %v1369_v54 = vor.u32 %v1503_v34, %v1366_v36  ;;  %v1988_v59 = vpack.c.bf16 %v300_v42, %v296_v41  ;;  %s992_s11 = scalar_lea.hbm %s2043_s5, %s1521_s29  ;;  %s293_s12 = scalar_lea.vmem [#allocation10], %s1113_s24 }
  0x52   : > { %745 = vmatpush.bf16.msra.mxu3 %v1325_v11  ;;  %v302_v38 = vld [vmem:[%s1964_s6 + $0x30] sm:$0xff]  ;;  %v303_v46 = vld [vmem:[%s1964_s6 + $0x38] sm:$0xff]  ;;  %v1166_v48 = vld [vmem:[#allocation5 + $0x68] sm:$0xf0]  ;;  %s993_s13 = sshll.u32 %s293_s12, 4  ;;  %s995_s14 = sshll.u32 %s992_s11, 4  ;;  %s994_s13 = int_to_ptr.vmem [resolvable:$true] %s993_s13  ;;  %s996_s14 = int_to_ptr.hbm [resolvable:$true] %s995_s14 }
  0x53   : > { %704 = vmatpush.bf16.msra.mxu0 %v1125_v18  ;;  %v1469_v51 = vld [vmem:[#allocation5 + $0xe4] sm:$0xf]  ;;  %v297_v52 = vld [vmem:[%s1964_s6 + $0x8] sm:$0xff]  ;;  %v1986_v55 = vpack.c.bf16 %v302_v38, %v298_v37  ;;  %v1990_v60 = vpack.c.bf16 %v303_v46, %v299_v43  ;;  %v1169_v63 = vor.u32 %v1453_v47, %v1166_v48  ;;  %v1451_v3 = vld [vmem:[#allocation5 + $0x54] sm:$0xf]  ;;  %s981_s22 = scalar_lea.sflag [#allocation4], %s1960_s17 }
  0x54   : > { %718 = vmatpush.bf16.msra.mxu1 %v1189_v23  ;;  %v301_v53 = vld [vmem:[%s1964_s6 + $0x28] sm:$0xff]  ;;  %v1485_v57 = vld [vmem:[#allocation5 + $0x164] sm:$0xf]  ;;  %v1158_v4 = vld [vmem:[#allocation5 + $0x58] sm:$0xf0]  ;;  %s1747_s7 = sshra.s32 %s996_s14, 4  ;;  %s1748_s7 = int_to_ptr.hbm [resolvable:$true] %s1747_s7 }
  0x55   : > { %732 = vmatpush.bf16.msra.mxu2 %v1253_v24  ;;  %v1230_v56 = vld [vmem:[#allocation5 + $0xe8] sm:$0xf0]  ;;  %v1501_v61 = vld [vmem:[#allocation5 + $0x1e4] sm:$0xf]  ;;  %v1992_v0 = vpack.c.bf16 %v301_v53, %v297_v52  ;;  %v1467_v5 = vld [vmem:[#allocation5 + $0xd4] sm:$0xf]  ;;  %v1161_v12 = vor.u32 %v1451_v3, %v1158_v4  ;;  %p1754_p7 = scmp.lt.s32.totalorder %s1748_s7, %s2043_s5 }
  0x56   : > { %746 = vmatpush.bf16.msra.mxu3 %v1317_v28  ;;  %v1294_v58 = vld [vmem:[#allocation5 + $0x168] sm:$0xf0]  ;;  %v1233_v1 = vor.u32 %v1469_v51, %v1230_v56  ;;  %v1222_v7 = vld [vmem:[#allocation5 + $0xd8] sm:$0xf0]  ;;  %v1483_v8 = vld [vmem:[#allocation5 + $0x154] sm:$0xf] }
  0x57   : > { %705 = vmatpush.bf16.msra.mxu0 %v1117_v35  ;;  %v1358_v62 = vld [vmem:[#allocation5 + $0x1e8] sm:$0xf0]  ;;  %v1297_v2 = vor.u32 %v1485_v57, %v1294_v58  ;;  %v1286_v9 = vld [vmem:[#allocation5 + $0x158] sm:$0xf0]  ;;  %v1499_v10 = vld [vmem:[#allocation5 + $0x1d4] sm:$0xf]  ;;  %v1225_v13 = vor.u32 %v1467_v5, %v1222_v7 }
  0x58   : > { %719 = vmatpush.bf16.msra.mxu1 %v1181_v39  ;;  %v1361_v6 = vor.u32 %v1501_v61, %v1358_v62  ;;  %v1350_v11 = vld [vmem:[#allocation5 + $0x1d8] sm:$0xf0]  ;;  %v1289_v14 = vor.u32 %v1483_v8, %v1286_v9  ;;  %v1449_v15 = vld [vmem:[#allocation5 + $0x44] sm:$0xf]  ;;  %v1150_v16 = vld [vmem:[#allocation5 + $0x48] sm:$0xf0] }
  0x59   : > { %733 = vmatpush.bf16.msra.mxu2 %v1245_v40  ;;  %v1465_v17 = vld [vmem:[#allocation5 + $0xc4] sm:$0xf]  ;;  %v1353_v18 = vor.u32 %v1499_v10, %v1350_v11  ;;  %v1214_v19 = vld [vmem:[#allocation5 + $0xc8] sm:$0xf0]  ;;  %v1153_v24 = vor.u32 %v1449_v15, %v1150_v16  ;;  %v1447_v27 = vld [vmem:[#allocation5 + $0x34] sm:$0xf] }
  0x5a   : > { %747 = vmatpush.bf16.msra.mxu3 %v1309_v44  ;;  %706 = vmatmul.bf16.vlgmr.msra.gmra.mxu0 %v1988_v59  ;;  %v1481_v20 = vld [vmem:[#allocation5 + $0x144] sm:$0xf]  ;;  %v1278_v21 = vld [vmem:[#allocation5 + $0x148] sm:$0xf0]  ;;  %v1217_v25 = vor.u32 %v1465_v17, %v1214_v19  ;;  %v1142_v28 = vld [vmem:[#allocation5 + $0x38] sm:$0xf0] }
  0x5b   : > { %754 = vmatpush.bf16.msrb.mxu0 %v1177_v45  ;;  %720 = vmatmul.bf16.vlgmr.msra.gmra.mxu1 %v1992_v0  ;;  %v1497_v22 = vld [vmem:[#allocation5 + $0x1c4] sm:$0xf]  ;;  %v1342_v23 = vld [vmem:[#allocation5 + $0x1c8] sm:$0xf0]  ;;  %v1281_v26 = vor.u32 %v1481_v20, %v1278_v21  ;;  %v1463_v29 = vld [vmem:[#allocation5 + $0xb4] sm:$0xf]  ;;  %v1145_v36 = vor.u32 %v1447_v27, %v1142_v28 }
  0x5c   : > { %768 = vmatpush.bf16.msrb.mxu1 %v1241_v49  ;;  %734 = vmatmul.bf16.vlgmr.msra.gmra.mxu2 %v1986_v55  ;;  %v1345_v30 = vor.u32 %v1497_v22, %v1342_v23  ;;  %v1206_v31 = vld [vmem:[#allocation5 + $0xb8] sm:$0xf0]  ;;  %v1479_v32 = vld [vmem:[#allocation5 + $0x134] sm:$0xf]  ;;  %v1445_v37 = vld [vmem:[#allocation5 + $0x24] sm:$0xf] }
  0x5d   : > { %782 = vmatpush.bf16.msrb.mxu2 %v1305_v50  ;;  %748 = vmatmul.bf16.vlgmr.msra.gmra.mxu3 %v1990_v60  ;;  %v1270_v33 = vld [vmem:[#allocation5 + $0x138] sm:$0xf0]  ;;  %v1495_v34 = vld [vmem:[#allocation5 + $0x1b4] sm:$0xf]  ;;  %v1209_v38 = vor.u32 %v1463_v29, %v1206_v31  ;;  %v1134_v40 = vld [vmem:[#allocation5 + $0x28] sm:$0xf0] }
  0x5e   : > { %796 = vmatpush.bf16.msrb.mxu3 %v1369_v54  ;;  %v1334_v35 = vld [vmem:[#allocation5 + $0x1b8] sm:$0xf0]  ;;  %v1273_v39 = vor.u32 %v1479_v32, %v1270_v33  ;;  %v1461_v41 = vld [vmem:[#allocation5 + $0xa4] sm:$0xf]  ;;  %v1198_v43 = vld [vmem:[#allocation5 + $0xa8] sm:$0xf0]  ;;  %v1137_v48 = vor.u32 %v1445_v37, %v1134_v40 }
  0x5f   : > { %755 = vmatpush.bf16.msrb.mxu0 %v1169_v63  ;;  %v1337_v42 = vor.u32 %v1495_v34, %v1334_v35  ;;  %v1477_v44 = vld [vmem:[#allocation5 + $0x124] sm:$0xf]  ;;  %v1262_v45 = vld [vmem:[#allocation5 + $0x128] sm:$0xf0]  ;;  %v1201_v49 = vor.u32 %v1461_v41, %v1198_v43  ;;  %v1443_v51 = vld [vmem:[#allocation5 + $0x14] sm:$0xf] }
  0x60   : > { %769 = vmatpush.bf16.msrb.mxu1 %v1233_v1  ;;  %v1493_v46 = vld [vmem:[#allocation5 + $0x1a4] sm:$0xf]  ;;  %v1326_v47 = vld [vmem:[#allocation5 + $0x1a8] sm:$0xf0]  ;;  %v1265_v50 = vor.u32 %v1477_v44, %v1262_v45  ;;  %v1126_v52 = vld [vmem:[#allocation5 + $0x18] sm:$0xf0] }
  0x61   : > { %783 = vmatpush.bf16.msrb.mxu2 %v1297_v2  ;;  %v1459_v53 = vld [vmem:[#allocation5 + $0x94] sm:$0xf]  ;;  %v1329_v54 = vor.u32 %v1493_v46, %v1326_v47  ;;  %v1190_v56 = vld [vmem:[#allocation5 + $0x98] sm:$0xf0]  ;;  %v1129_v63 = vor.u32 %v1443_v51, %v1126_v52  ;;  %v1441_v3 = vld [vmem:[#allocation5 + $0x4] sm:$0xf] }
  0x62   : > { %797 = vmatpush.bf16.msrb.mxu3 %v1361_v6  ;;  %v1475_v57 = vld [vmem:[#allocation5 + $0x114] sm:$0xf]  ;;  %v1254_v58 = vld [vmem:[#allocation5 + $0x118] sm:$0xf0]  ;;  %v1193_v1 = vor.u32 %v1459_v53, %v1190_v56  ;;  %v1118_v4 = vld [vmem:[#allocation5 + $0x8] sm:$0xf0] }
  0x63   : > { %756 = vmatpush.bf16.msrb.mxu0 %v1161_v12  ;;  %v1491_v61 = vld [vmem:[#allocation5 + $0x194] sm:$0xf]  ;;  %v1318_v62 = vld [vmem:[#allocation5 + $0x198] sm:$0xf0]  ;;  %v1257_v2 = vor.u32 %v1475_v57, %v1254_v58  ;;  %v1457_v5 = vld [vmem:[#allocation5 + $0x84] sm:$0xf]  ;;  %v1121_v12 = vor.u32 %v1441_v3, %v1118_v4 }
  0x64   : > { %770 = vmatpush.bf16.msrb.mxu1 %v1225_v13  ;;  %v1321_v6 = vor.u32 %v1491_v61, %v1318_v62  ;;  %v1182_v7 = vld [vmem:[#allocation5 + $0x88] sm:$0xf0]  ;;  %v1473_v8 = vld [vmem:[#allocation5 + $0x104] sm:$0xf]  ;;  %v1512_v16 = vld [vmem:[#allocation8 + $0x38] sm:$0xff]  ;;  %s1749_s15 = scalar_lea.hbm %s1748_s7, 8 }
  0x65   : > { %784 = vmatpush.bf16.msrb.mxu2 %v1289_v14  ;;  %v1246_v9 = vld [vmem:[#allocation5 + $0x108] sm:$0xf0]  ;;  %v1489_v10 = vld [vmem:[#allocation5 + $0x184] sm:$0xf]  ;;  %v1185_v13 = vor.u32 %v1457_v5, %v1182_v7  ;;  %v1511_v17 = vld [vmem:[#allocation8 + $0x30] sm:$0xff]  ;;  %p1750_p1 = scmp.ne.s32.totalorder %s1748_s7, %s1749_s15  ;;  %s1753_s6 = scalar_lea.hbm %s2043_s5, 32 }
  0x66   : > { %798 = vmatpush.bf16.msrb.mxu3 %v1353_v18  ;;  %v1310_v11 = vld [vmem:[#allocation5 + $0x188] sm:$0xf0]  ;;  %v1249_v14 = vor.u32 %v1473_v8, %v1246_v9  ;;  %v1509_v19 = vld [vmem:[#allocation8 + $0x20] sm:$0xff]  ;;  %v1508_v20 = vld [vmem:[#allocation8 + $0x18] sm:$0xff]  ;;  %p1755_p2 = scmp.lt.s32.totalorder %s1753_s6, %s1749_s15 }
  0x67   : > { %757 = vmatpush.bf16.msrb.mxu0 %v1153_v24  ;;  %v1313_v15 = vor.u32 %v1489_v10, %v1310_v11  ;;  %v1510_v18 = vld [vmem:[#allocation8 + $0x28] sm:$0xff]  ;;  %v1507_v21 = vld [vmem:[#allocation8 + $0x10] sm:$0xff]  ;;  %v1505_v23 = vld [vmem:[#allocation8] sm:$0xff]  ;;  %p1751_p4 = pnand %p1750_p1, %p1932_p5 }
  0x68   : > { %771 = vmatpush.bf16.msrb.mxu1 %v1217_v25  ;;  %v1506_v22 = vld [vmem:[#allocation8 + $0x8] sm:$0xff]  ;;  %v1520_v24 = vld [vmem:[#allocation8 + $0x78] sm:$0xff]  ;;  %v1517_v25 = vld [vmem:[#allocation8 + $0x60] sm:$0xff]  ;;  %p1756_p9 = por %p1755_p2, %p1754_p7 }
  0x69   : > { %785 = vmatpush.bf16.msrb.mxu2 %v1281_v26  ;;  %v1515_v35 = vld [vmem:[#allocation8 + $0x50] sm:$0xff]  ;;  %v1514_v40 = vld [vmem:[#allocation8 + $0x48] sm:$0xff]  ;;  %v1513_v46 = vld [vmem:[#allocation8 + $0x40] sm:$0xff]  ;;  %p1752_p8 = pneg %p1751_p4 }
  0x6a   : > { %799 = vmatpush.bf16.msrb.mxu3 %v1345_v30  ;;  %v1516_v30 = vld [vmem:[#allocation8 + $0x58] sm:$0xff] }
  0x6b   : > { %758 = vmatpush.bf16.msrb.mxu0 %v1145_v36  ;;  %v1612_v11 = vld [vmem:[%s2042_s4] ss:$0 sm:$0xff]  ;;  %p1757_p10 = pnand %p1756_p9, %p1752_p8 }
  0x6c   : > { %772 = vmatpush.bf16.msrb.mxu1 %v1209_v38 }
  0x6d   : > { %786 = vmatpush.bf16.msrb.mxu2 %v1273_v39 }
  0x6e   : > { %800 = vmatpush.bf16.msrb.mxu3 %v1337_v42 }
  0x6f   : > { %759 = vmatpush.bf16.msrb.mxu0 %v1137_v48 }
  0x70   : > { %773 = vmatpush.bf16.msrb.mxu1 %v1201_v49 }
  0x71   : > { %787 = vmatpush.bf16.msrb.mxu2 %v1265_v50 }
  0x72   : > { %801 = vmatpush.bf16.msrb.mxu3 %v1329_v54 }
  0x73   : > { %760 = vmatpush.bf16.msrb.mxu0 %v1129_v63 }
  0x74   : > { %774 = vmatpush.bf16.msrb.mxu1 %v1193_v1 }
  0x75   : > { %788 = vmatpush.bf16.msrb.mxu2 %v1257_v2 }
  0x76   : > { %802 = vmatpush.bf16.msrb.mxu3 %v1321_v6 }
  0x77   : > { %761 = vmatpush.bf16.msrb.mxu0 %v1121_v12 }
  0x78   : > { %775 = vmatpush.bf16.msrb.mxu1 %v1185_v13 }
  0x79   : > { %789 = vmatpush.bf16.msrb.mxu2 %v1249_v14 }
  0x7a   : > { %803 = vmatpush.bf16.msrb.mxu3 %v1313_v15  ;;  %762 = vmatmul.bf16.vlgmr.msrb.gmra.mxu0 %v1988_v59  ;;  %v1519_v59 = vld [vmem:[#allocation8 + $0x70] sm:$0xff] }
  0x7b   : > { %948 = vmatpush.bf16.msra.mxu0 %v1512_v16  ;;  %776 = vmatmul.bf16.vlgmr.msrb.gmra.mxu1 %v1992_v0  ;;  %v372_v0 = vld [vmem:[#allocation7] sm:$0x3] }
  0x7c   : > { %790 = vmatmul.bf16.vlgmr.msrb.gmra.mxu2 %v1986_v55  ;;  %962 = vmatpush.bf16.msra.mxu1 %v1520_v24  ;;  %v1518_v55 = vld [vmem:[#allocation8 + $0x68] sm:$0xff]  ;;  %v375_v49 = vperm.slane %v372_v0, 1 }
  0x7d   : > { %804 = vmatmul.bf16.vlgmr.msrb.gmra.mxu3 %v1990_v60  ;;  %v374_v60 = vperm.slane %v372_v0, 0 }
  0x7f   : > { %949 = vmatpush.bf16.msra.mxu0 %v1511_v17 }
  0x80   : > { %963 = vmatpush.bf16.msra.mxu1 %v1519_v59 }
  0x83   : > { %950 = vmatpush.bf16.msra.mxu0 %v1510_v18 }
  0x84   : > { %964 = vmatpush.bf16.msra.mxu1 %v1518_v55 }
  0x87   : > { %951 = vmatpush.bf16.msra.mxu0 %v1509_v19 }
  0x88   : > { %965 = vmatpush.bf16.msra.mxu1 %v1517_v25 }
  0x8b   : > { %952 = vmatpush.bf16.msra.mxu0 %v1508_v20 }
  0x8c   : > { %966 = vmatpush.bf16.msra.mxu1 %v1516_v30 }
  0x8f   : > { %953 = vmatpush.bf16.msra.mxu0 %v1507_v21 }
  0x90   : > { %967 = vmatpush.bf16.msra.mxu1 %v1515_v35 }
  0x93   : > { %954 = vmatpush.bf16.msra.mxu0 %v1506_v22 }
  0x94   : > { %968 = vmatpush.bf16.msra.mxu1 %v1514_v40 }
  0x97   : > { %955 = vmatpush.bf16.msra.mxu0 %v1505_v23 }
  0x98   : > { %969 = vmatpush.bf16.msra.mxu1 %v1513_v46 }
  0xd7   : > { %v707_v26 = vpop.f32.mrf.mxu0 }
  0xd8   : > { %v708_v27 = vadd.f32 %v707_v26, %v374_v60  ;;  %v721_v28 = vpop.f32.mrf.mxu1 }
  0xda   : > { %v722_v29 = vadd.f32 %v721_v28, %v708_v27 }
  0xdf   : > { %v735_v31 = vpop.f32.mrf.mxu2  ;;  %v709_v34 = vpop.f32.mrf.mxu0 }
  0xe0   : > { %v749_v32 = vpop.f32.mrf.mxu3  ;;  %v736_v33 = vadd.f32 %v735_v31, %v722_v29  ;;  %v710_v36 = vadd.f32 %v709_v34, %v374_v60  ;;  %v723_v37 = vpop.f32.mrf.mxu1 }
  0xe2   : > { %v724_v38 = vadd.f32 %v723_v37, %v710_v36  ;;  %v750_v39 = vadd.f32 %v749_v32, %v736_v33 }
  0xe4   : > { %v810_v44 = vmax.f32 %v750_v39, 0.0 }
  0xe7   : > { %v737_v41 = vpop.f32.mrf.mxu2 }
  0xe8   : > { %v738_v42 = vadd.f32 %v737_v41, %v724_v38  ;;  %v751_v43 = vpop.f32.mrf.mxu3 }
  0xea   : > { %v752_v45 = vadd.f32 %v751_v43, %v738_v42 }
  0xec   : > { %v812_v47 = vmax.f32 %v752_v45, 0.0 }
  0xee   : > { %v814_v48 = vpack.c.bf16 %v812_v47, %v810_v44 }
  0xf0   : > { %956 = vmatmul.bf16.vlgmr.msra.gmra.mxu0 %v814_v48 }
  0xf7   : > { %v763_v50 = vpop.f32.mrf.mxu0 }
  0xf8   : > { %v777_v51 = vpop.f32.mrf.mxu1  ;;  %v764_v52 = vadd.f32 %v763_v50, %v375_v49 }
  0xfa   : > { %v778_v54 = vadd.f32 %v777_v51, %v764_v52 }
  0xff   : > { %v791_v53 = vpop.f32.mrf.mxu2  ;;  %v765_v57 = vpop.f32.mrf.mxu0 }
 0x100   : > { %v805_v56 = vpop.f32.mrf.mxu3  ;;  %v766_v58 = vadd.f32 %v765_v57, %v375_v49  ;;  %v792_v61 = vadd.f32 %v791_v53, %v778_v54  ;;  %v779_v62 = vpop.f32.mrf.mxu1 }
 0x102   : > { %v780_v63 = vadd.f32 %v779_v62, %v766_v58  ;;  %v806_v2 = vadd.f32 %v805_v56, %v792_v61 }
 0x104   : > { %v811_v6 = vmax.f32 %v806_v2, 0.0 }
 0x107   : > { %v793_v1 = vpop.f32.mrf.mxu2 }
 0x108   : > { %v794_v3 = vadd.f32 %v793_v1, %v780_v63  ;;  %v807_v4 = vpop.f32.mrf.mxu3 }
 0x10a   : > { %v808_v5 = vadd.f32 %v807_v4, %v794_v3 }
 0x10c   : > { %v813_v7 = vmax.f32 %v808_v5, 0.0 }
 0x10e   : > { %v815_v8 = vpack.c.bf16 %v813_v7, %v811_v6 }
 0x110   : > { %970 = vmatmul.bf16.vlgmr.msra.gmra.mxu1 %v815_v8 }
 0x16d   : > { %v957_v9 = vpop.f32.mrf.mxu0 }
 0x16e   : > { %v958_v13 = vadd.f32 %v1612_v11, %v957_v9 }
 0x175   : > { %v959_v12 = vpop.f32.mrf.mxu0 }
 0x176   : > { %v960_v14 = vadd.f32 %v1612_v11, %v959_v12 }
 0x18d   : > { %v971_v10 = vpop.f32.mrf.mxu1 }
 0x18e   : > { %v972_v16 = vadd.f32 %v971_v10, %v958_v13 }
 0x195   : > { %v973_v15 = vpop.f32.mrf.mxu1 }
 0x196   : > { %v974_v17 = vadd.f32 %v973_v15, %v960_v14 }
 0x198   : > { %v1525_v18 = vpack.c.bf16 %v974_v17, %v972_v16 }
 0x19a   : > { %1526 = vst [vmem:[%s293_s12] sm:$0xff] %v1525_v18  }
 0x19b   : > { %1760 = shalt.err (!%p1757_p10)
}
 0x19c   : > { %s1818_s17 = smov 64   ;;  %s1819_s16 = smov 4  }
 0x19d   : > { %1541 = dma.vmem_to_hbm [thread:$0]  (%p1932_p5), %s994_s13, 128, %s996_s14, %s981_s22, %s1818_s17, %s1818_s17, %s1819_s16  }
 0x19e PF: > { %p1568_p11 = scmp.ge.s32.totalorder %s1807_s21, 2  ;;  %s1010_s23 = sand.u32 1, %s1795_s18  }
 0x19f   : > { %s1011_s26 = scalar_lea.sflag [#allocation4], %s1010_s23 }
 0x1a0   : > { %p1558_p12 = pnand %p1568_p11, %p1885_p6 }
 0x1a2   : > { %p1559_p13 = pneg %p1558_p12 }
 0x1a4   : > { %1790 = dma.done.wait (%p1559_p13), %s1011_s26, 128  }
 0x1a5   : > { %1792 = vsyncadd (%p1559_p13), %s1011_s26, 4294967168  ;;  %p20_p0 = scmp.ge.s32.totalorder %s1918_s30, 6   ;;  %s2050_s18 = smov %s1799_s19 }
 0x1a6   : > { %s2051_s19 = smov %s1803_s20  ;;  %s2052_s20 = smov %s1928_s9 }
 0x1a7   : > { %s2053_s21 = smov %s1918_s30  ;;  %22 = sbr.rel (!%p20_p0) target bundleno = 7 (0x7), region = 97 }
 0x1ac   :  { %1017 = vsyncpa [#allocation3], 1 }
 0x1ad   :  { %1019 = vsyncpa [#allocation3 + $0x1], 1 }
 0x1ae   :  { %1020 = vsyncpa [#allocation6], 1 }
 0x1af   :  { %1021 = vsyncpa [#allocation9], 1 }
 0x1b0   :  { %1022 = vsyncpa [#allocation4], 1 }
 0x1b1   :  { %1024 = vsyncpa [#allocation4 + $0x1], 1 }

</bundles_post_ra>
